<compile_context>
chip_gen: v6e
topology: v6e:2x2x1
jax: 0.10.0
libtpu: 0.0.40
codegen_flags: <defaults>
</compile_context>

<pallas_src>
import functools

import jax
import jax.numpy as jnp
from jax.experimental import pallas as pl
from jax.experimental.pallas import tpu as pltpu

_LANE = 128
_BF16_SUBLANE = 16


def _round_up(n, m):
    return ((n + m - 1) // m) * m


def net_kernel(x_ref, w1_ref, b1_ref, w2_ref, b2_ref, w3_ref, b3_ref, o_ref):
    # ---- hidden1 + ReLU: bf16 MXU operands, f32 accumulation / elementwise ----
    x = x_ref[...]                                                    # (TB, IN) bf16
    h1 = jnp.dot(x, w1_ref[...], preferred_element_type=jnp.float32) + b1_ref[...]
    h1 = jnp.maximum(h1, 0.0)                                         # (TB, H_P) f32

    # ---- hidden2 + softmax ----
    # Padding mask is baked into b2: padded W2 columns are zero, so padded logits
    # equal b2's -1e30 padding and exp() underflows them to 0 (no iota/where here).
    h2 = jnp.dot(h1.astype(jnp.bfloat16), w2_ref[...],
                 preferred_element_type=jnp.float32) + b2_ref[...]    # (TB, H_P) f32
    m = jnp.max(h2, axis=-1, keepdims=True)
    e = jnp.exp(h2 - m)
    p = e * pl.reciprocal(jnp.sum(e, axis=-1, keepdims=True), approx=True)  # EUP slot

    # ---- predict; bf16 store halves HBM writeback (writeback-bound at large B) ----
    out = jnp.dot(p.astype(jnp.bfloat16), w3_ref[...],
                  preferred_element_type=jnp.float32) + b3_ref[...]   # (TB, OUT_P)
    o_ref[...] = out.astype(o_ref.dtype)


def prepare_params(params):
    """Pad / cast parameters ONCE (hoisted out of the per-call path)."""
    w1, b1, w2, b2, w3, b3 = params
    n_input, n_hidden = w1.shape
    n_output = w3.shape[1]
    h_p = _round_up(n_hidden, _LANE)
    o_p = _round_up(n_output, _LANE)
    f32, bf16 = jnp.float32, jnp.bfloat16

    # Padded W1/b1 columns give h1_pad = relu(0) = 0; padded b2 columns carry the
    # softmax mask (-1e30); padded W3 rows are zero so output padding contributes
    # nothing and is sliced off by the wrapper.
    w1p = jnp.zeros((n_input, h_p), f32).at[:, :n_hidden].set(w1).astype(bf16)
    b1p = jnp.zeros((1, h_p), f32).at[:, :n_hidden].set(b1)
    w2p = jnp.zeros((h_p, h_p), f32).at[:n_hidden, :n_hidden].set(w2).astype(bf16)
    b2p = jnp.full((1, h_p), -1e30, f32).at[:, :n_hidden].set(b2)
    w3p = jnp.zeros((h_p, o_p), f32).at[:n_hidden, :n_output].set(w3).astype(bf16)
    b3p = jnp.zeros((1, o_p), f32).at[:, :n_output].set(b3)
    return (w1p, b1p, w2p, b2p, w3p, b3p), n_output


def net_forward(x, padded_params, n_output, *, block_b=1024):
    w1p, b1p, w2p, b2p, w3p, b3p = padded_params
    n_input = w1p.shape[0]
    o_p = w3p.shape[1]
    B = x.shape[0]

    # Batch tile: multiple of 16 sublanes (bf16 vreg packs (16,128)); sized so that
    # for large B the grid has >= 2 steps ("parallel" axis can then shard across
    # v7x's two TensorCores). block_b=1024 amortizes per-step pipeline overhead.
    tb = max(_BF16_SUBLANE, min(block_b, _round_up((B + 1) // 2, _BF16_SUBLANE)))
    b_p = _round_up(B, tb)

    # n_input deliberately NOT lane-padded: (tb, n_input) is a legal full-last-dim
    # block and padding K to 128 would 4x the x HBM read for zero MXU benefit.
    xp = x.astype(jnp.bfloat16)
    if b_p != B:
        xp = jnp.zeros((b_p, n_input), jnp.bfloat16).at[:B, :].set(xp)

    def const_spec(shape):
        return pl.BlockSpec(shape, lambda i: (0,) * len(shape))

    # NOTE: if n_hidden ever scales into the thousands, switch the weight specs to
    # pipeline_mode=pl.Buffered(1) and add a K-reduction grid axis ("arbitrary");
    # at the current size resident double-buffered weights use < 1 MiB of VMEM.
    out_padded = pl.pallas_call(
        net_kernel,
        out_shape=jax.ShapeDtypeStruct((b_p, o_p), jnp.bfloat16),
        grid_spec=pl.GridSpec(
            grid=(b_p // tb,),
            in_specs=[
                pl.BlockSpec((tb, n_input), lambda i: (i, 0)),   # x: batch-tiled
                const_spec(w1p.shape), const_spec(b1p.shape),    # weights: resident
                const_spec(w2p.shape), const_spec(b2p.shape),
                const_spec(w3p.shape), const_spec(b3p.shape),
            ],
            out_specs=pl.BlockSpec((tb, o_p), lambda i: (i, 0)),
        ),
        compiler_params=pltpu.CompilerParams(
            dimension_semantics=("parallel",),
            vmem_limit_bytes=32 * 1024 * 1024,
        ),
    )(xp, w1p, b1p, w2p, b2p, w3p, b3p)

    return out_padded[:B, :n_output].astype(jnp.float32)


def init_params(key, n_input, n_hidden, n_output):
    # Deterministic init mimicking nn.Linear's U(-1/sqrt(fan_in), 1/sqrt(fan_in)).
    ks = jax.random.split(key, 6)

    def linear(kw, kb, fan_in, fan_out):
        bound = 1.0 / jnp.sqrt(fan_in)
        w = jax.random.uniform(kw, (fan_in, fan_out), jnp.float32, -bound, bound)
        b = jax.random.uniform(kb, (1, fan_out), jnp.float32, -bound, bound)
        return w, b

    w1, b1 = linear(ks[0], ks[1], n_input, n_hidden)
    w2, b2 = linear(ks[2], ks[3], n_hidden, n_hidden)
    w3, b3 = linear(ks[4], ks[5], n_hidden, n_output)
    return (w1, b1, w2, b2, w3, b3)


if __name__ == "__main__":
    key = jax.random.PRNGKey(0)
    k_x, k_p = jax.random.split(key)

    batch, n_input, n_hidden, n_output = 8, 32, 64, 16
    x = jax.random.normal(k_x, (batch, n_input), jnp.float32)
    params = init_params(k_p, n_input, n_hidden, n_output)

    # Pad/cast weights once; only x is handled per call.
    padded_params, n_out = prepare_params(params)
    forward = jax.jit(functools.partial(
        net_forward, padded_params=padded_params, n_output=n_out))

    out = forward(x)
    jax.block_until_ready(out)
    assert out.shape == (batch, n_output)

    # Reference in plain f32 JAX (same math as the PyTorch module; F.softmax on a
    # 2-D input acts along dim=1). Tolerance loosened for bf16 MXU operands, bf16
    # output store, and the approximate reciprocal in the softmax.
    w1, b1, w2, b2, w3, b3 = params
    h1 = jnp.maximum(x @ w1 + b1, 0.0)
    h2 = h1 @ w2 + b2
    p = jax.nn.softmax(h2, axis=-1)
    ref = p @ w3 + b3
    assert jnp.allclose(out, ref, atol=2e-2, rtol=2e-2), (
        f"max abs err {jnp.max(jnp.abs(out - ref))}")

    print("KERNEL_OK")
</pallas_src>

<mosaic_0001>
module attributes {stable_mosaic.version = 11 : i64} {
  func.func @net_kernel(%arg0: i32, %arg1: memref<16x32xbf16, #tpu.memory_space<vmem>>, %arg2: memref<32x128xbf16, #tpu.memory_space<vmem>>, %arg3: memref<1x128xf32, #tpu.memory_space<vmem>>, %arg4: memref<128x128xbf16, #tpu.memory_space<vmem>>, %arg5: memref<1x128xf32, #tpu.memory_space<vmem>>, %arg6: memref<128x128xbf16, #tpu.memory_space<vmem>>, %arg7: memref<1x128xf32, #tpu.memory_space<vmem>>, %arg8: memref<16x128xbf16, #tpu.memory_space<vmem>>) attributes {dimension_semantics = [#tpu.dimension_semantics<parallel>], iteration_bounds = array<i64: 1>, scalar_prefetch = 0 : i64, scratch_operands = 0 : i64, tpu.core_type = #tpu.core_type<tc>, window_params = [{transform_indices = @transform_0, window_bounds = array<i64: 16, 32>}, {pipeline_mode = #tpu.pipeline_mode<synchronous>, transform_indices = @transform_1, window_bounds = array<i64: 32, 128>}, {pipeline_mode = #tpu.pipeline_mode<synchronous>, transform_indices = @transform_2, window_bounds = array<i64: 1, 128>}, {pipeline_mode = #tpu.pipeline_mode<synchronous>, transform_indices = @transform_3, window_bounds = array<i64: 128, 128>}, {pipeline_mode = #tpu.pipeline_mode<synchronous>, transform_indices = @transform_4, window_bounds = array<i64: 1, 128>}, {pipeline_mode = #tpu.pipeline_mode<synchronous>, transform_indices = @transform_5, window_bounds = array<i64: 128, 128>}, {pipeline_mode = #tpu.pipeline_mode<synchronous>, transform_indices = @transform_6, window_bounds = array<i64: 1, 128>}, {transform_indices = @transform_7, window_bounds = array<i64: 16, 128>}]} {
    %c0 = arith.constant 0 : index
    %c0_0 = arith.constant 0 : index
    %0 = vector.load %arg1[%c0, %c0_0] : memref<16x32xbf16, #tpu.memory_space<vmem>>, vector<16x32xbf16>
    %c0_1 = arith.constant 0 : index
    %c0_2 = arith.constant 0 : index
    %1 = vector.load %arg2[%c0_1, %c0_2] : memref<32x128xbf16, #tpu.memory_space<vmem>>, vector<32x128xbf16>
    %cst = arith.constant dense<0.000000e+00> : vector<16x128xf32>
    %2 = tpu.matmul %0, %1, %cst {dimension_numbers = #tpu.dot_dimension_numbers<[1], [0], [0], [1], [0, 0, 1, 1], [], []>} : vector<16x32xbf16>, vector<32x128xbf16>, vector<16x128xf32> -> vector<16x128xf32>
    %c0_3 = arith.constant 0 : index
    %c0_4 = arith.constant 0 : index
    %3 = vector.load %arg3[%c0_3, %c0_4] : memref<1x128xf32, #tpu.memory_space<vmem>>, vector<1x128xf32>
    %4 = vector.broadcast %3 : vector<1x128xf32> to vector<16x128xf32>
    %5 = arith.addf %2, %4 : vector<16x128xf32>
    %cst_5 = arith.constant 0.000000e+00 : f32
    %6 = vector.broadcast %cst_5 : f32 to vector<16x128xf32>
    %7 = arith.maximumf %5, %6 : vector<16x128xf32>
    %8 = arith.truncf %7 : vector<16x128xf32> to vector<16x128xbf16>
    %c0_6 = arith.constant 0 : index
    %c0_7 = arith.constant 0 : index
    %9 = vector.load %arg4[%c0_6, %c0_7] : memref<128x128xbf16, #tpu.memory_space<vmem>>, vector<128x128xbf16>
    %cst_8 = arith.constant dense<0.000000e+00> : vector<16x128xf32>
    %10 = tpu.matmul %8, %9, %cst_8 {dimension_numbers = #tpu.dot_dimension_numbers<[1], [0], [0], [1], [0, 0, 1, 1], [], []>} : vector<16x128xbf16>, vector<128x128xbf16>, vector<16x128xf32> -> vector<16x128xf32>
    %c0_9 = arith.constant 0 : index
    %c0_10 = arith.constant 0 : index
    %11 = vector.load %arg5[%c0_9, %c0_10] : memref<1x128xf32, #tpu.memory_space<vmem>>, vector<1x128xf32>
    %12 = vector.broadcast %11 : vector<1x128xf32> to vector<16x128xf32>
    %13 = arith.addf %10, %12 : vector<16x128xf32>
    %cst_11 = arith.constant dense<0xFF800000> : vector<16xf32>
    %14 = vector.multi_reduction <maximumf>, %13, %cst_11 [1] : vector<16x128xf32> to vector<16xf32>
    %15 = vector.shape_cast %14 : vector<16xf32> to vector<16x1xf32>
    %16 = vector.broadcast %15 : vector<16x1xf32> to vector<16x128xf32>
    %17 = arith.subf %13, %16 : vector<16x128xf32>
    %18 = math.exp %17 : vector<16x128xf32>
    %cst_12 = arith.constant dense<0.000000e+00> : vector<16xf32>
    %19 = vector.multi_reduction <add>, %18, %cst_12 [1] : vector<16x128xf32> to vector<16xf32>
    %20 = vector.shape_cast %19 : vector<16xf32> to vector<16x1xf32>
    %21 = tpu.reciprocal %20 {approx = true} : vector<16x1xf32> -> vector<16x1xf32>
    %22 = vector.broadcast %21 : vector<16x1xf32> to vector<16x128xf32>
    %23 = arith.mulf %18, %22 : vector<16x128xf32>
    %24 = arith.truncf %23 : vector<16x128xf32> to vector<16x128xbf16>
    %c0_13 = arith.constant 0 : index
    %c0_14 = arith.constant 0 : index
    %25 = vector.load %arg6[%c0_13, %c0_14] : memref<128x128xbf16, #tpu.memory_space<vmem>>, vector<128x128xbf16>
    %cst_15 = arith.constant dense<0.000000e+00> : vector<16x128xf32>
    %26 = tpu.matmul %24, %25, %cst_15 {dimension_numbers = #tpu.dot_dimension_numbers<[1], [0], [0], [1], [0, 0, 1, 1], [], []>} : vector<16x128xbf16>, vector<128x128xbf16>, vector<16x128xf32> -> vector<16x128xf32>
    %c0_16 = arith.constant 0 : index
    %c0_17 = arith.constant 0 : index
    %27 = vector.load %arg7[%c0_16, %c0_17] : memref<1x128xf32, #tpu.memory_space<vmem>>, vector<1x128xf32>
    %28 = vector.broadcast %27 : vector<1x128xf32> to vector<16x128xf32>
    %29 = arith.addf %26, %28 : vector<16x128xf32>
    %30 = arith.truncf %29 : vector<16x128xf32> to vector<16x128xbf16>
    %c0_18 = arith.constant 0 : index
    %c0_19 = arith.constant 0 : index
    %31 = vector.load %arg8[%c0_18, %c0_19] : memref<16x128xbf16, #tpu.memory_space<vmem>>, vector<16x128xbf16>
    tpu.vector_store %arg8[%c0_18, %c0_19], %30 {strides = array<i32>} : memref<16x128xbf16, #tpu.memory_space<vmem>>, vector<16x128xbf16>,
    return
  }
  func.func @transform_0(%arg0: i32) -> (i32, i32) {
    %c0_i32 = arith.constant 0 : i32
    %c0_i32_0 = arith.constant 0 : i32
    return %arg0, %c0_i32 : i32, i32
  }
  func.func @transform_1(%arg0: i32) -> (i32, i32) {
    %c0_i32 = arith.constant 0 : i32
    %c0_i32_0 = arith.constant 0 : i32
    %c0_i32_1 = arith.constant 0 : i32
    return %c0_i32, %c0_i32_0 : i32, i32
  }
  func.func @transform_2(%arg0: i32) -> (i32, i32) {
    %c0_i32 = arith.constant 0 : i32
    %c0_i32_0 = arith.constant 0 : i32
    %c0_i32_1 = arith.constant 0 : i32
    return %c0_i32, %c0_i32_0 : i32, i32
  }
  func.func @transform_3(%arg0: i32) -> (i32, i32) {
    %c0_i32 = arith.constant 0 : i32
    %c0_i32_0 = arith.constant 0 : i32
    %c0_i32_1 = arith.constant 0 : i32
    return %c0_i32, %c0_i32_0 : i32, i32
  }
  func.func @transform_4(%arg0: i32) -> (i32, i32) {
    %c0_i32 = arith.constant 0 : i32
    %c0_i32_0 = arith.constant 0 : i32
    %c0_i32_1 = arith.constant 0 : i32
    return %c0_i32, %c0_i32_0 : i32, i32
  }
  func.func @transform_5(%arg0: i32) -> (i32, i32) {
    %c0_i32 = arith.constant 0 : i32
    %c0_i32_0 = arith.constant 0 : i32
    %c0_i32_1 = arith.constant 0 : i32
    return %c0_i32, %c0_i32_0 : i32, i32
  }
  func.func @transform_6(%arg0: i32) -> (i32, i32) {
    %c0_i32 = arith.constant 0 : i32
    %c0_i32_0 = arith.constant 0 : i32
    %c0_i32_1 = arith.constant 0 : i32
    return %c0_i32, %c0_i32_0 : i32, i32
  }
  func.func @transform_7(%arg0: i32) -> (i32, i32) {
    %c0_i32 = arith.constant 0 : i32
    %c0_i32_0 = arith.constant 0 : i32
    return %arg0, %c0_i32 : i32, i32
  }
}

</mosaic_0001>

<bundles_post_ra>
// kernel: net_forward.1
= control target key start
LH: loop header
LB: loop body
LE: loop exit
PB: predicated region body
PF: predicated region fallthrough
CT: control target
= control target key end

     0   :  { %12 = vsyncpa [#allocation3], 0  ;;  %s667_s0 = inlined_call_operand.vmem [shape: bf16[16,32], index: 0, kind: input, shape index: {}]   ;;  %s668_s1 = inlined_call_operand.vmem [shape: bf16[32,128], index: 1, kind: input, shape index: {}]   ;;  %s669_s2 = inlined_call_operand.vmem [shape: f32[1,128], index: 2, kind: input, shape index: {}]   ;;  %s670_s3 = inlined_call_operand.hbm [shape: bf16[128,128], index: 3, kind: input, shape index: {}]   ;;  %s671_s4 = inlined_call_operand.vmem [shape: f32[1,128], index: 4, kind: input, shape index: {}]   ;;  %s672_s5 = inlined_call_operand.hbm [shape: bf16[128,128], index: 5, kind: input, shape index: {}]   ;;  %s673_s6 = inlined_call_operand.vmem [shape: f32[1,128], index: 6, kind: input, shape index: {}]   ;;  %s674_s7 = inlined_call_operand.vmem [shape: bf16[16,128], index: 7, kind: output, shape index: {}]  }
   0x1   :  { %13 = vsyncpa [#allocation5], 0  ;;  %s570_s24 = smov [#allocation2]  }
   0x2   :  { %s25_s25 = sshll.u32 %s570_s24, 4  ;;  %s26_s25 = int_to_ptr.vmem [resolvable:$true] %s25_s25 }
   0x3   :  { %s534_s26 = scalar_lea.vmem %s26_s25, 1024  ;;  %p539_p1 = scmp.lt.s32.totalorder %s26_s25, %s26_s25 }
   0x4   :  { %p535_p0 = scmp.ne.s32.totalorder %s26_s25, %s534_s26  ;;  %p540_p2 = scmp.lt.s32.totalorder %s534_s26, %s534_s26 }
   0x6   :  { %p541_p3 = por %p540_p2, %p539_p1 }
   0x8   :  { %p542_p4 = pnand %p541_p3, %p535_p0 }
   0xa   :  { %545 = shalt.err (!%p542_p4)
}
   0xb   :  { %s571_s27 = smov 64   ;;  %s572_s28 = smov 4  }
   0xc   :  { %31 = dma.hbm_to_vmem [thread:$0]  %s670_s3, 1024, %s26_s25, [#allocation3], %s571_s27, %s571_s27, %s572_s28  }
   0xd   :  { %s573_s8 = smov [#allocation4]  }
   0xe   :  { %s39_s9 = sshll.u32 %s573_s8, 4  ;;  %s40_s9 = int_to_ptr.vmem [resolvable:$true] %s39_s9 }
   0xf   :  { %s554_s10 = scalar_lea.vmem %s40_s9, 1024  ;;  %p559_p6 = scmp.lt.s32.totalorder %s40_s9, %s40_s9 }
  0x10   :  { %p555_p5 = scmp.ne.s32.totalorder %s40_s9, %s554_s10  ;;  %p560_p7 = scmp.lt.s32.totalorder %s554_s10, %s554_s10 }
  0x12   :  { %p561_p8 = por %p560_p7, %p559_p6 }
  0x14   :  { %p562_p9 = pnand %p561_p8, %p555_p5 }
  0x16   :  { %565 = shalt.err (!%p562_p9)
}
  0x17   :  { %45 = dma.hbm_to_vmem [thread:$0]  %s672_s5, 1024, %s40_s9, [#allocation5], %s571_s27, %s571_s27, %s572_s28  }
  0x18   :  { %566 = dma.done.wait [#allocation3], 1024  }
  0x19   :  { %567 = vsyncadd [#allocation3], 4294966272 }
  0x1a   :  { %568 = dma.done.wait [#allocation5], 1024  }
  0x1b   :  { %569 = vsyncadd [#allocation5], 4294966272  ;;  %v574_v0 = vmov 0.0   ;;  %vm575_vm0 = vmmov 0   ;;  %v499_v1 = vld [vmem:[%s668_s1 + $0x8] sm:$0xff]   ;;  %v500_v2 = vld [vmem:[%s668_s1] sm:$0xff]  }
  0x1c   :  { %445 = vmatprep.subr.bf16.mxu0 %v574_v0  ;;  %449 = vmatprep.mubr.msk.bf16.mxu0 %vm575_vm0, %v574_v0  ;;  %v502_v3 = vld [vmem:[#allocation2 + $0x38] sm:$0xff]   ;;  %v501_v4 = vld [vmem:[%s667_s0] sm:$0xff]   ;;  %v503_v5 = vld [vmem:[#allocation2 + $0x30] sm:$0xff]   ;;  %vm85_vm1 = vcmask 261120  }
  0x1d   :  { %453 = vmatprep.subr.bf16.mxu1 %v574_v0  ;;  %469 = vmatprep.mubr.msk.bf16.mxu1 %vm575_vm0, %v574_v0  ;;  %v504_v6 = vld [vmem:[#allocation2 + $0x28] sm:$0xff]   ;;  %v505_v7 = vld [vmem:[#allocation2 + $0x20] sm:$0xff]   ;;  %v506_v8 = vld [vmem:[#allocation2 + $0x18] sm:$0xff]  }
  0x1e   :  { %446 = vmatpush3.bf16.msra.mxu0 %v499_v1  ;;  %454 = vmatpush3.bf16.msra.mxu1 %v502_v3  ;;  %v507_v9 = vld [vmem:[#allocation2 + $0x10] sm:$0xff]   ;;  %v508_v10 = vld [vmem:[#allocation2 + $0x8] sm:$0xff]   ;;  %v509_v11 = vld [vmem:[#allocation2] sm:$0xff]  }
  0x1f   :  { %447 = vmatprep.subr.bf16.mxu0 %v574_v0  ;;  %455 = vmatprep.subr.bf16.mxu1 %v574_v0  ;;  %v392_v12 = vld [vmem:[%s669_s2] ss:$0 sm:$0xff]  ;;  %v510_v29 = vld [vmem:[#allocation4 + $0x38] sm:$0xff]   ;;  %v511_v30 = vld [vmem:[#allocation4 + $0x30] sm:$0xff]  }
  0x20   :  { %v397_v22 = vld [vmem:[%s671_s4] ss:$0 sm:$0xff]  ;;  %v512_v31 = vld [vmem:[#allocation4 + $0x28] sm:$0xff]   ;;  %v514_v41 = vld [vmem:[#allocation4 + $0x18] sm:$0xff]  }
  0x21   :  { %v513_v40 = vld [vmem:[#allocation4 + $0x20] sm:$0xff]   ;;  %v515_v42 = vld [vmem:[#allocation4 + $0x10] sm:$0xff]   ;;  %v516_v43 = vld [vmem:[#allocation4 + $0x8] sm:$0xff]  }
  0x22   :  { %448 = vmatpush3.bf16.msra.mxu0 %v500_v2  ;;  %456 = vmatpush3.bf16.msra.mxu1 %v503_v5  ;;  %v517_v44 = vld [vmem:[#allocation4] sm:$0xff]  }
  0x23   :  { %473 = vmatprep.subr.bf16.mxu0 %v574_v0  ;;  %457 = vmatprep.subr.bf16.mxu1 %v574_v0  ;;  %v406_v53 = vld [vmem:[%s673_s6] ss:$0 sm:$0xff] }
  0x25   :  { %450 = vmatmul.mubr.msk.bf16.vlgmr.msra.gmra.mxu0 %vm85_vm1, %v501_v4 }
  0x26   :  { %489 = vmatprep.mubr.msk.bf16.mxu0 %vm575_vm0, %v574_v0  ;;  %458 = vmatpush3.bf16.msra.mxu1 %v504_v6 }
  0x27   :  { %459 = vmatprep.subr.bf16.mxu1 %v574_v0  ;;  %474 = vmatpush3.bf16.msra.mxu0 %v510_v29 }
  0x28   :  { %475 = vmatprep.subr.bf16.mxu0 %v574_v0 }
  0x2a   :  { %460 = vmatpush3.bf16.msra.mxu1 %v505_v7 }
  0x2b   :  { %461 = vmatprep.subr.bf16.mxu1 %v574_v0  ;;  %476 = vmatpush3.bf16.msra.mxu0 %v511_v30 }
  0x2c   :  { %477 = vmatprep.subr.bf16.mxu0 %v574_v0 }
  0x2e   :  { %462 = vmatpush3.bf16.msra.mxu1 %v506_v8 }
  0x2f   :  { %463 = vmatprep.subr.bf16.mxu1 %v574_v0  ;;  %478 = vmatpush3.bf16.msra.mxu0 %v512_v31 }
  0x30   :  { %479 = vmatprep.subr.bf16.mxu0 %v574_v0 }
  0x32   :  { %464 = vmatpush3.bf16.msra.mxu1 %v507_v9 }
  0x33   :  { %465 = vmatprep.subr.bf16.mxu1 %v574_v0  ;;  %480 = vmatpush3.bf16.msra.mxu0 %v513_v40 }
  0x34   :  { %481 = vmatprep.subr.bf16.mxu0 %v574_v0 }
  0x36   :  { %466 = vmatpush3.bf16.msra.mxu1 %v508_v10 }
  0x37   :  { %467 = vmatprep.subr.bf16.mxu1 %v574_v0  ;;  %482 = vmatpush3.bf16.msra.mxu0 %v514_v41 }
  0x38   :  { %483 = vmatprep.subr.bf16.mxu0 %v574_v0 }
  0x3a   :  { %468 = vmatpush3.bf16.msra.mxu1 %v509_v11 }
  0x3b   :  { %484 = vmatpush3.bf16.msra.mxu0 %v515_v42 }
  0x3c   :  { %485 = vmatprep.subr.bf16.mxu0 %v574_v0 }
  0x3f   :  { %486 = vmatpush3.bf16.msra.mxu0 %v516_v43 }
  0x40   :  { %487 = vmatprep.subr.bf16.mxu0 %v574_v0 }
  0x43   :  { %488 = vmatpush3.bf16.msra.mxu0 %v517_v44 }
  0xe5   :  { %v123_v13 = vpop.f32.mrf.mxu0 }
  0xe6   :  { %v124_v15 = vadd.f32 %v392_v12, %v123_v13 }
  0xe7   :  { %v451_v14 = vpop.f32.mrf.mxu0 }
  0xe8   :  { %v130_v19 = vmax.f32 %v124_v15, 0.0 }
  0xe9   :  { %v126_v16 = vpop.f32.mrf.mxu0 }
  0xea   :  { %v127_v17 = vadd.f32 %v392_v12, %v126_v16 }
  0xeb   :  { %v452_v18 = vpop.f32.mrf.mxu0 }
  0xec   :  { %v131_v20 = vmax.f32 %v127_v17, 0.0 }
  0xee   :  { %v132_v21 = vpack.c.bf16 %v131_v20, %v130_v19 }
  0xf0   :  { %470 = vmatmul.mubr.bf16.vlgmr.msra.gmra.mxu1 %v132_v21 }
 0x1b0   :  { %v238_v23 = vpop.f32.mrf.mxu1 }
 0x1b1   :  { %v239_v24 = vadd.f32 %v397_v22, %v238_v23 }
 0x1b2   :  { %v471_v25 = vpop.f32.mrf.mxu1 }
 0x1b3   :  { %245 = vmax.xlane.f32.xlu0 %v239_v24 }
 0x1b4   :  { %v241_v26 = vpop.f32.mrf.mxu1 }
 0x1b5   :  { %v242_v27 = vadd.f32 %v397_v22, %v241_v26 }
 0x1b6   :  { %v472_v28 = vpop.f32.mrf.mxu1 }
 0x1b7   :  { %247 = vmax.xlane.f32.xlu0 %v242_v27 }
 0x23c   :  { %v246_v32 = vpop.xlane.xlu0 %245 }
 0x23d   :  { %v249_v33 = vsub.f32 %v239_v24, %v246_v32 }
 0x23f   :  { %v251_v34 = vmul.f32 1.442695, %v249_v33 }
 0x240   :  { %v248_v35 = vpop.xlane.xlu0 %247 }
 0x241   :  { %518 = vpow2.f32 %v251_v34  ;;  %v250_v36 = vsub.f32 %v242_v27, %v248_v35 }
 0x243   :  { %v253_v37 = vmul.f32 1.442695, %v250_v36 }
 0x245   :  { %520 = vpow2.f32 %v253_v37 }
 0x24e   :  { %v519_v38 = vpop.eup %518 }
 0x24f   :  { %255 = vadd.xlane.f32.xlu1 %v519_v38 }
 0x252   :  { %v521_v39 = vpop.eup %520 }
 0x253   :  { %257 = vadd.xlane.f32.xlu1 %v521_v39 }
 0x2d8   :  { %v256_v45 = vpop.xlane.xlu1 %255 }
 0x2d9   :  { %522 = vrcp.f32 %v256_v45 }
 0x2dc   :  { %v258_v46 = vpop.xlane.xlu1 %257 }
 0x2dd   :  { %524 = vrcp.f32 %v258_v46 }
 0x2e6   :  { %v523_v47 = vpop.eup %522 }
 0x2e7   :  { %v261_v49 = vmul.f32 %v523_v47, %v519_v38 }
 0x2ea   :  { %v525_v48 = vpop.eup %524 }
 0x2eb   :  { %v262_v50 = vmul.f32 %v525_v48, %v521_v39 }
 0x2ed   :  { %v263_v51 = vpack.c.bf16 %v262_v50, %v261_v49 }
 0x2ef   :  { %490 = vmatmul.mubr.bf16.vlgmr.msra.gmra.mxu0 %v263_v51 }
 0x3af   :  { %v369_v52 = vpop.f32.mrf.mxu0 }
 0x3b0   :  { %v370_v56 = vadd.f32 %v406_v53, %v369_v52 }
 0x3b1   :  { %v491_v54 = vpop.f32.mrf.mxu0 }
 0x3b3   :  { %v372_v55 = vpop.f32.mrf.mxu0 }
 0x3b4   :  { %v373_v57 = vadd.f32 %v406_v53, %v372_v55 }
 0x3b5   :  { %v492_v58 = vpop.f32.mrf.mxu0 }
 0x3b6   :  { %v422_v59 = vpack.c.bf16 %v373_v57, %v370_v56 }
 0x3b8   :  { %423 = vst [vmem:[%s674_s7] sm:$0xff] %v422_v59  }
 0x3b9   :  { %390 = vsyncpa [#allocation3], 1 }
 0x3ba   :  { %391 = vsyncpa [#allocation5], 1 }

</bundles_post_ra>
